<compile_context>
chip_gen: v5e
topology: v5e:2x2
jax: 0.10.0
libtpu: 0.0.40
codegen_flags: <defaults>
</compile_context>

<pallas_src>
import math
import jax
import jax.numpy as jnp
from jax.experimental import pallas as pl
from jax.experimental.pallas import tpu as pltpu


def _round_up(n, m):
    return ((n + m - 1) // m) * m


def _gru_cell_kernel(xh_ref, h_ref, w_ref, b_ref, out_ref):
    """One row-tile of the GRU cell.

    xh_ref : (TM, K)     concatenated [x, h] rows (K = I + H), matmul dtype
    h_ref  : (TM, Hp)    hidden rows, lane-padded, original dtype
    w_ref  : (K, 4*Hp)   fused weight, gate blocks [r_fused, i_fused, n_x, n_h]
    b_ref  : (1, 4*Hp)   fused bias (f32), [bx_r+bh_r, bx_i+bh_i, bx_n, bh_n]
    out_ref: (TM, Hp)    new hidden rows (lane-padded)
    """
    hp = out_ref.shape[-1]

    # Hot path: single MXU matmul, f32 accumulation, f32 bias add.
    gates = jnp.dot(xh_ref[...], w_ref[...],
                    preferred_element_type=jnp.float32) + b_ref[...]

    # Lane-aligned gate slices (hp is a multiple of 128).
    r = jax.nn.sigmoid(gates[:, 0 * hp:1 * hp])          # resetgate
    z = jax.nn.sigmoid(gates[:, 1 * hp:2 * hp])          # inputgate
    i_n = gates[:, 2 * hp:3 * hp]                        # x-part of n gate
    h_n = gates[:, 3 * hp:4 * hp]                        # h-part of n gate

    n = jnp.tanh(i_n + r * h_n)                          # newgate

    h = h_ref[...].astype(jnp.float32)
    hy = n + z * (h - n)
    out_ref[...] = hy.astype(out_ref.dtype)


def gru_cell_forward(x, hidden, wx, bx, wh, bh, *, tm=256,
                     matmul_dtype=None, vmem_limit_bytes=None):
    """GRUCell forward.

    x      : (B, S, input_size)
    hidden : (B, S, hidden_size)
    wx     : (3*hidden_size, input_size)   -- PyTorch nn.Linear weight layout
    bx     : (3*hidden_size,)
    wh     : (3*hidden_size, hidden_size)
    bh     : (3*hidden_size,)
    tm     : row tile (rounded down to the padded row count if larger)
    matmul_dtype : optional dtype for the MXU operands (e.g. jnp.bfloat16);
                   gate math stays in f32 regardless.
    returns: (B, S, hidden_size)
    """
    B, S, I = x.shape
    H = hidden.shape[-1]
    M = B * S
    K = I + H
    Hp = _round_up(H, 128)          # lane-aligned per-gate width
    out_dtype = hidden.dtype
    mm_dtype = matmul_dtype if matmul_dtype is not None else x.dtype

    # ---- host-side operand preparation (runs once per call, outside kernel) ---
    # Split PyTorch-layout weights / biases into per-gate pieces.
    wx_r, wx_i, wx_n = wx[:H], wx[H:2 * H], wx[2 * H:]          # (H, I) each
    wh_r, wh_i, wh_n = wh[:H], wh[H:2 * H], wh[2 * H:]          # (H, H) each
    bx_r, bx_i, bx_n = bx[:H], bx[H:2 * H], bx[2 * H:]
    bh_r, bh_i, bh_n = bh[:H], bh[H:2 * H], bh[2 * H:]

    # Fused weight: (K, 4*Hp) with lane-aligned, zero-padded gate blocks.
    #   block 0: r-gate, x- and h- parts stacked  -> i_r + h_r after matmul
    #   block 1: i-gate, x- and h- parts stacked  -> i_i + h_i after matmul
    #   block 2: n-gate, x part only              -> i_n
    #   block 3: n-gate, h part only              -> h_n
    w = jnp.zeros((K, 4 * Hp), jnp.float32)
    w = w.at[:I, 0 * Hp:0 * Hp + H].set(wx_r.T.astype(jnp.float32))
    w = w.at[I:, 0 * Hp:0 * Hp + H].set(wh_r.T.astype(jnp.float32))
    w = w.at[:I, 1 * Hp:1 * Hp + H].set(wx_i.T.astype(jnp.float32))
    w = w.at[I:, 1 * Hp:1 * Hp + H].set(wh_i.T.astype(jnp.float32))
    w = w.at[:I, 2 * Hp:2 * Hp + H].set(wx_n.T.astype(jnp.float32))
    w = w.at[I:, 3 * Hp:3 * Hp + H].set(wh_n.T.astype(jnp.float32))
    w = w.astype(mm_dtype)

    b = jnp.zeros((1, 4 * Hp), jnp.float32)
    b = b.at[0, 0 * Hp:0 * Hp + H].set((bx_r + bh_r).astype(jnp.float32))
    b = b.at[0, 1 * Hp:1 * Hp + H].set((bx_i + bh_i).astype(jnp.float32))
    b = b.at[0, 2 * Hp:2 * Hp + H].set(bx_n.astype(jnp.float32))
    b = b.at[0, 3 * Hp:3 * Hp + H].set(bh_n.astype(jnp.float32))

    # Row tiling with padded tail (no divisibility requirement on B*S).
    tm_eff = min(tm, _round_up(M, 8))
    Mp = _round_up(M, tm_eff)

    x2 = x.reshape(M, I)
    h2 = hidden.reshape(M, H)
    xh = jnp.concatenate([x2, h2], axis=-1).astype(mm_dtype)     # (M, K)
    xh = jnp.pad(xh, ((0, Mp - M), (0, 0)))                      # (Mp, K)
    h_pad = jnp.pad(h2, ((0, Mp - M), (0, Hp - H)))              # (Mp, Hp)

    grid = (Mp // tm_eff,)

    itemsize_mm = jnp.dtype(mm_dtype).itemsize
    bytes_accessed = int(xh.size * itemsize_mm + h_pad.size * h_pad.dtype.itemsize
                         + w.size * itemsize_mm + b.size * 4
                         + Mp * Hp * jnp.dtype(out_dtype).itemsize)
    cost = pl.CostEstimate(
        flops=int(2 * Mp * K * 4 * Hp),
        transcendentals=int(3 * Mp * Hp),
        bytes_accessed=bytes_accessed,
    )

    # Raise the scoped VMEM limit only when the resident working set needs it.
    # TODO(synk): for very large H on v7x (64 MiB physical VMEM) the 4*Hp gate
    # axis should get its own grid dimension instead of being fully resident.
    vmem_est = (w.size * itemsize_mm + b.size * 4
                + 2 * tm_eff * (K * itemsize_mm
                                + Hp * h_pad.dtype.itemsize
                                + Hp * jnp.dtype(out_dtype).itemsize)
                + tm_eff * 4 * Hp * 4)
    vmem_limit = vmem_limit_bytes
    if vmem_limit is None and vmem_est > 24 * 1024 * 1024:
        vmem_limit = min(int(vmem_est * 2), 64 * 1024 * 1024)

    out = pl.pallas_call(
        _gru_cell_kernel,
        out_shape=jax.ShapeDtypeStruct((Mp, Hp), out_dtype),
        grid_spec=pltpu.PrefetchScalarGridSpec(
            num_scalar_prefetch=0,
            grid=grid,
            in_specs=[
                pl.BlockSpec((tm_eff, K), lambda i: (i, 0)),        # [x, h] rows
                pl.BlockSpec((tm_eff, Hp), lambda i: (i, 0)),       # hidden rows
                pl.BlockSpec((K, 4 * Hp), lambda i: (0, 0)),        # fused W (resident)
                pl.BlockSpec((1, 4 * Hp), lambda i: (0, 0)),        # fused bias
            ],
            out_specs=pl.BlockSpec((tm_eff, Hp), lambda i: (i, 0)),
        ),
        compiler_params=pltpu.CompilerParams(
            dimension_semantics=("parallel",),
            vmem_limit_bytes=vmem_limit),
        cost_estimate=cost,
    )(xh, h_pad, w, b)

    return out[:M, :H].reshape(B, S, H)


def init_gru_params(key, input_size, hidden_size, dtype=jnp.float32):
    """Deterministic init matching PyTorch reset_parameters: U(-std, std)."""
    std = 1.0 / math.sqrt(hidden_size)
    k1, k2, k3, k4 = jax.random.split(key, 4)
    wx = jax.random.uniform(k1, (3 * hidden_size, input_size), dtype, -std, std)
    bx = jax.random.uniform(k2, (3 * hidden_size,), dtype, -std, std)
    wh = jax.random.uniform(k3, (3 * hidden_size, hidden_size), dtype, -std, std)
    bh = jax.random.uniform(k4, (3 * hidden_size,), dtype, -std, std)
    return wx, bx, wh, bh


def gru_cell_ref(x, hidden, wx, bx, wh, bh):
    """Pure-JAX reference mirroring the PyTorch forward."""
    gate_x = jnp.einsum("bsi,gi->bsg", x, wx) + bx
    gate_h = jnp.einsum("bsh,gh->bsg", hidden, wh) + bh
    i_r, i_i, i_n = jnp.split(gate_x, 3, axis=-1)
    h_r, h_i, h_n = jnp.split(gate_h, 3, axis=-1)
    resetgate = jax.nn.sigmoid(i_r + h_r)
    inputgate = jax.nn.sigmoid(i_i + h_i)
    newgate = jnp.tanh(i_n + resetgate * h_n)
    return newgate + inputgate * (hidden - newgate)


if __name__ == "__main__":
    batch, seq, input_size, hidden_size = 2, 8, 16, 32

    key = jax.random.PRNGKey(0)
    kx, kh, kp = jax.random.split(key, 3)
    x = jax.random.normal(kx, (batch, seq, input_size), jnp.float32)
    hidden = jax.random.normal(kh, (batch, seq, hidden_size), jnp.float32)
    wx, bx, wh, bh = init_gru_params(kp, input_size, hidden_size)

    hy = gru_cell_forward(x, hidden, wx, bx, wh, bh)
    hy = jax.block_until_ready(hy)

    hy_ref = gru_cell_ref(x, hidden, wx, bx, wh, bh)
    assert hy.shape == (batch, seq, hidden_size)
    assert jnp.allclose(hy, hy_ref, atol=1e-5, rtol=1e-5), "mismatch vs reference"

    print("KERNEL_OK")
</pallas_src>

<mosaic_0001>
module attributes {stable_mosaic.version = 11 : i64} {
  func.func @_gru_cell_kernel(%arg0: i32, %arg1: memref<16x48xf32, #tpu.memory_space<vmem>>, %arg2: memref<16x128xf32, #tpu.memory_space<vmem>>, %arg3: memref<48x512xf32, #tpu.memory_space<vmem>>, %arg4: memref<1x512xf32, #tpu.memory_space<vmem>>, %arg5: memref<16x128xf32, #tpu.memory_space<vmem>>) attributes {dimension_semantics = [#tpu.dimension_semantics<parallel>], iteration_bounds = array<i64: 1>, scalar_prefetch = 0 : i64, scratch_operands = 0 : i64, tpu.core_type = #tpu.core_type<tc>, window_params = [{transform_indices = @transform_0, window_bounds = array<i64: 16, 48>}, {transform_indices = @transform_1, window_bounds = array<i64: 16, 128>}, {pipeline_mode = #tpu.pipeline_mode<synchronous>, transform_indices = @transform_2, window_bounds = array<i64: 48, 512>}, {pipeline_mode = #tpu.pipeline_mode<synchronous>, transform_indices = @transform_3, window_bounds = array<i64: 1, 512>}, {transform_indices = @transform_4, window_bounds = array<i64: 16, 128>}]} {
    %c0 = arith.constant 0 : index
    %c0_0 = arith.constant 0 : index
    %0 = vector.load %arg1[%c0, %c0_0] : memref<16x48xf32, #tpu.memory_space<vmem>>, vector<16x48xf32>
    %c0_1 = arith.constant 0 : index
    %c0_2 = arith.constant 0 : index
    %1 = vector.load %arg3[%c0_1, %c0_2] : memref<48x512xf32, #tpu.memory_space<vmem>>, vector<48x512xf32>
    %cst = arith.constant dense<0.000000e+00> : vector<16x512xf32>
    %2 = tpu.matmul %0, %1, %cst {dimension_numbers = #tpu.dot_dimension_numbers<[1], [0], [0], [1], [0, 0, 1, 1], [], []>} : vector<16x48xf32>, vector<48x512xf32>, vector<16x512xf32> -> vector<16x512xf32>
    %c0_3 = arith.constant 0 : index
    %c0_4 = arith.constant 0 : index
    %3 = vector.load %arg4[%c0_3, %c0_4] : memref<1x512xf32, #tpu.memory_space<vmem>>, vector<1x512xf32>
    %4 = vector.broadcast %3 : vector<1x512xf32> to vector<16x512xf32>
    %5 = arith.addf %2, %4 : vector<16x512xf32>
    %6 = vector.extract_strided_slice %5 {offsets = [0, 0], sizes = [16, 128], strides = [1, 1]} : vector<16x512xf32> to vector<16x128xf32>
    %7 = arith.negf %6 : vector<16x128xf32>
    %8 = math.exp %7 : vector<16x128xf32>
    %cst_5 = arith.constant 1.000000e+00 : f32
    %9 = vector.broadcast %cst_5 : f32 to vector<16x128xf32>
    %10 = arith.addf %9, %8 : vector<16x128xf32>
    %11 = arith.divf %9, %10 : vector<16x128xf32>
    %12 = vector.extract_strided_slice %5 {offsets = [0, 128], sizes = [16, 128], strides = [1, 1]} : vector<16x512xf32> to vector<16x128xf32>
    %13 = arith.negf %12 : vector<16x128xf32>
    %14 = math.exp %13 : vector<16x128xf32>
    %cst_6 = arith.constant 1.000000e+00 : f32
    %15 = vector.broadcast %cst_6 : f32 to vector<16x128xf32>
    %16 = arith.addf %15, %14 : vector<16x128xf32>
    %17 = arith.divf %15, %16 : vector<16x128xf32>
    %18 = vector.extract_strided_slice %5 {offsets = [0, 256], sizes = [16, 128], strides = [1, 1]} : vector<16x512xf32> to vector<16x128xf32>
    %19 = vector.extract_strided_slice %5 {offsets = [0, 384], sizes = [16, 128], strides = [1, 1]} : vector<16x512xf32> to vector<16x128xf32>
    %20 = arith.mulf %11, %19 : vector<16x128xf32>
    %21 = arith.addf %18, %20 : vector<16x128xf32>
    %22 = math.tanh %21 : vector<16x128xf32>
    %c0_7 = arith.constant 0 : index
    %c0_8 = arith.constant 0 : index
    %23 = vector.load %arg2[%c0_7, %c0_8] : memref<16x128xf32, #tpu.memory_space<vmem>>, vector<16x128xf32>
    %24 = arith.subf %23, %22 : vector<16x128xf32>
    %25 = arith.mulf %17, %24 : vector<16x128xf32>
    %26 = arith.addf %22, %25 : vector<16x128xf32>
    %c0_9 = arith.constant 0 : index
    %c0_10 = arith.constant 0 : index
    %27 = vector.load %arg5[%c0_9, %c0_10] : memref<16x128xf32, #tpu.memory_space<vmem>>, vector<16x128xf32>
    tpu.vector_store %arg5[%c0_9, %c0_10], %26 {strides = array<i32>} : memref<16x128xf32, #tpu.memory_space<vmem>>, vector<16x128xf32>,
    return
  }
  func.func @transform_0(%arg0: i32) -> (i32, i32) {
    %c0_i32 = arith.constant 0 : i32
    %c0_i32_0 = arith.constant 0 : i32
    return %arg0, %c0_i32 : i32, i32
  }
  func.func @transform_1(%arg0: i32) -> (i32, i32) {
    %c0_i32 = arith.constant 0 : i32
    %c0_i32_0 = arith.constant 0 : i32
    return %arg0, %c0_i32 : i32, i32
  }
  func.func @transform_2(%arg0: i32) -> (i32, i32) {
    %c0_i32 = arith.constant 0 : i32
    %c0_i32_0 = arith.constant 0 : i32
    %c0_i32_1 = arith.constant 0 : i32
    return %c0_i32, %c0_i32_0 : i32, i32
  }
  func.func @transform_3(%arg0: i32) -> (i32, i32) {
    %c0_i32 = arith.constant 0 : i32
    %c0_i32_0 = arith.constant 0 : i32
    %c0_i32_1 = arith.constant 0 : i32
    return %c0_i32, %c0_i32_0 : i32, i32
  }
  func.func @transform_4(%arg0: i32) -> (i32, i32) {
    %c0_i32 = arith.constant 0 : i32
    %c0_i32_0 = arith.constant 0 : i32
    return %arg0, %c0_i32 : i32, i32
  }
}

</mosaic_0001>

<bundles_post_ra>
// kernel: tpu_custom_call.1
= control target key start
LH: loop header
LB: loop body
LE: loop exit
PB: predicated region body
PF: predicated region fallthrough
CT: control target
= control target key end

     0   :  { %9 = vsyncpa [#allocation3], 0  ;;  %s591_s0 = inlined_call_operand.hbm [shape: f32[16,48], index: 0, kind: input, shape index: {}]   ;;  %s592_s1 = inlined_call_operand.hbm [shape: f32[16,128], index: 1, kind: input, shape index: {}]   ;;  %s593_s2 = inlined_call_operand.hbm [shape: f32[48,512], index: 2, kind: input, shape index: {}]   ;;  %s594_s3 = inlined_call_operand.hbm [shape: f32[1,512], index: 3, kind: input, shape index: {}]   ;;  %s595_s4 = inlined_call_operand.hbm [shape: f32[16,128], index: 4, kind: output, shape index: {}]  }
   0x1   :  { %10 = vsyncpa [#allocation6], 0 }
   0x2   :  { %11 = vsyncpa [#allocation9], 0 }
   0x3   :  { %12 = vsyncpa [#allocation4], 0  ;;  %s30_s17 = sshll.u32 %s592_s1, 4  ;;  %s496_s18 = smov [#allocation5]   ;;  %s31_s17 = int_to_ptr.hbm [resolvable:$true] %s30_s17 }
   0x4   :  { %s32_s19 = sshll.u32 %s496_s18, 4  ;;  %s17_s22 = sshll.u32 %s591_s0, 4  ;;  %s33_s19 = int_to_ptr.vmem [resolvable:$true] %s32_s19  ;;  %s18_s22 = int_to_ptr.hbm [resolvable:$true] %s17_s22 }
   0x5   :  { %s497_s23 = smov 128   ;;  %s498_s24 = smov 8  }
   0x6   :  { %38 = dma.hbm_to_vmem [thread:$0]  %s31_s17, 256, %s33_s19, [#allocation6], %s497_s23, %s497_s23, %s498_s24  }
   0x7   :  { %s499_s25 = smov [#allocation2]   ;;  %s43_s1 = sshll.u32 %s593_s2, 4  ;;  %s44_s1 = int_to_ptr.hbm [resolvable:$true] %s43_s1 }
   0x8   :  { %s19_s26 = sshll.u32 %s499_s25, 4  ;;  %s500_s0 = smov [#allocation7]   ;;  %s20_s26 = int_to_ptr.vmem [resolvable:$true] %s19_s26 }
   0x9   :  { %25 = dma.hbm_to_vmem [thread:$0]  %s18_s22, 256, %s20_s26, [#allocation3], %s497_s23, %s497_s23, %s498_s24  }
   0xa   :  { %s45_s29 = sshll.u32 %s500_s0, 4  ;;  %s57_s6 = sshll.u32 %s594_s3, 4  ;;  %s46_s29 = int_to_ptr.vmem [resolvable:$true] %s45_s29  ;;  %s58_s6 = int_to_ptr.hbm [resolvable:$true] %s57_s6 }
   0xb   :  { %s501_s7 = smov 512   ;;  %s502_s8 = smov 32  }
   0xc   :  { %51 = dma.hbm_to_vmem [thread:$0]  %s44_s1, 3072, %s46_s29, [#allocation6], %s501_s7, %s501_s7, %s502_s8  }
   0xd   :  { %s503_s9 = smov [#allocation8]  }
   0xe   :  { %s59_s10 = sshll.u32 %s503_s9, 4  ;;  %s60_s10 = int_to_ptr.vmem [resolvable:$true] %s59_s10 }
   0xf   :  { %62 = dma.hbm_to_vmem [thread:$0]  %s58_s6, 64, %s60_s10, [#allocation9]  }
  0x10   :  { %488 = dma.done.wait [#allocation3], 256  }
  0x11   :  { %489 = vsyncadd [#allocation3], 4294967040 }
  0x12   :  { %490 = dma.done.wait [#allocation6], 3328  }
  0x13   :  { %491 = vsyncadd [#allocation6], 4294963968 }
  0x14   :  { %492 = dma.done.wait [#allocation9], 64  }
  0x15   :  { %493 = vsyncadd [#allocation9], 4294967232  ;;  %v101_v0 = vld [vmem:[#allocation7 + $0xa0] sm:$0xff]  ;;  %v102_v1 = vld [vmem:[#allocation7 + $0xa8] sm:$0xff]  ;;  %vm115_vm0 = vcmask 392192   ;;  %s504_s2 = smov [#allocation10]  }
  0x16   :  { %v97_v2 = vld [vmem:[#allocation7 + $0x80] sm:$0xff]  ;;  %132 = vmatpush.msra.mxu0 %v101_v0  ;;  %155 = vmatpush.msra.mxu1 %v102_v1  ;;  %v98_v3 = vld [vmem:[#allocation7 + $0x88] sm:$0xff]  ;;  %v104_v8 = vld [vmem:[#allocation7 + $0xb8] sm:$0xff]  ;;  %s310_s3 = sshll.u32 %s504_s2, 4  ;;  %s312_s13 = sshll.u32 %s595_s4, 4  ;;  %s311_s3 = int_to_ptr.vmem [resolvable:$true] %s310_s3  ;;  %s313_s13 = int_to_ptr.hbm [resolvable:$true] %s312_s13 }
  0x17   :  { %v93_v4 = vld [vmem:[#allocation7 + $0x60] sm:$0xff]  ;;  %v94_v5 = vld [vmem:[#allocation7 + $0x68] sm:$0xff]  ;;  %v103_v9 = vld [vmem:[#allocation7 + $0xb0] sm:$0xff]  ;;  %201 = vmatpush.msra.mxu3 %v104_v8 }
  0x18   :  { %133 = vmatpush.msra.mxu0 %v97_v2  ;;  %156 = vmatpush.msra.mxu1 %v98_v3  ;;  %v89_v6 = vld [vmem:[#allocation7 + $0x40] sm:$0xff]  ;;  %v90_v7 = vld [vmem:[#allocation7 + $0x48] sm:$0xff]  ;;  %v100_v10 = vld [vmem:[#allocation7 + $0x98] sm:$0xff] }
  0x19   :  { %v99_v11 = vld [vmem:[#allocation7 + $0x90] sm:$0xff]  ;;  %v85_v12 = vld [vmem:[#allocation7 + $0x20] sm:$0xff]  ;;  %v86_v13 = vld [vmem:[#allocation7 + $0x28] sm:$0xff]  ;;  %178 = vmatpush.msra.mxu2 %v103_v9  ;;  %202 = vmatpush.msra.mxu3 %v100_v10 }
  0x1a   :  { %134 = vmatpush.msra.mxu0 %v93_v4  ;;  %157 = vmatpush.msra.mxu1 %v94_v5  ;;  %v96_v14 = vld [vmem:[#allocation7 + $0x78] sm:$0xff]  ;;  %v95_v15 = vld [vmem:[#allocation7 + $0x70] sm:$0xff]  ;;  %v81_v16 = vld [vmem:[#allocation7] sm:$0xff] }
  0x1b   :  { %v82_v17 = vld [vmem:[#allocation7 + $0x8] sm:$0xff]  ;;  %179 = vmatpush.msra.mxu2 %v99_v11  ;;  %v79_v18 = vld [vmem:[#allocation2] sm:$0xff]  ;;  %203 = vmatpush.msra.mxu3 %v96_v14  ;;  %v92_v19 = vld [vmem:[#allocation7 + $0x58] sm:$0xff] }
  0x1c   :  { %135 = vmatpush.msra.mxu0 %v89_v6  ;;  %158 = vmatpush.msra.mxu1 %v90_v7  ;;  %v91_v20 = vld [vmem:[#allocation7 + $0x50] sm:$0xff]  ;;  %v88_v21 = vld [vmem:[#allocation7 + $0x38] sm:$0xff]  ;;  %v80_v25 = vld [vmem:[#allocation2 + $0x8] sm:$0xff] }
  0x1d   :  { %180 = vmatpush.msra.mxu2 %v95_v15  ;;  %v87_v22 = vld [vmem:[#allocation7 + $0x30] sm:$0xff]  ;;  %204 = vmatpush.msra.mxu3 %v92_v19  ;;  %v84_v23 = vld [vmem:[#allocation7 + $0x18] sm:$0xff]  ;;  %v556_v26 = vld [vmem:[#allocation8] sm:$0xf] }
  0x1e   :  { %136 = vmatpush.msra.mxu0 %v85_v12  ;;  %159 = vmatpush.msra.mxu1 %v86_v13  ;;  %v83_v24 = vld [vmem:[#allocation7 + $0x10] sm:$0xff]  ;;  %v107_v27 = vperm.slane %v556_v26, 0  ;;  %v108_v28 = vperm.slane %v556_v26, 1  ;;  %v110_v53 = vperm.slane %v556_v26, 3  ;;  %v109_v57 = vperm.slane %v556_v26, 2 }
  0x1f   :  { %181 = vmatpush.msra.mxu2 %v91_v20  ;;  %205 = vmatpush.msra.mxu3 %v88_v21 }
  0x20   :  { %137 = vmatpush.msra.mxu0 %v81_v16  ;;  %160 = vmatpush.msra.mxu1 %v82_v17 }
  0x21   :  { %327 = vmatmul.msk.f32.vlgmr.msra.gmra.mxu0 %vm115_vm0, %v79_v18  ;;  %329 = vmatmul.msk.f32.vlgmr.msra.gmra.mxu1 %vm115_vm0, %v79_v18 }
  0x22   :  { %182 = vmatpush.msra.mxu2 %v87_v22  ;;  %206 = vmatpush.msra.mxu3 %v84_v23 }
  0x23   :  { %333 = vmatmul.msk.f32.vlgmr.msra.gmra.mxu3 %vm115_vm0, %v79_v18 }
  0x24   :  { %183 = vmatpush.msra.mxu2 %v83_v24 }
  0x25   :  { %331 = vmatmul.msk.f32.vlgmr.msra.gmra.mxu2 %vm115_vm0, %v79_v18 }
  0x29   :  { %328 = vmatmul.msk.f32.gmra.mxu0 %vm115_vm0, %v80_v25  ;;  %330 = vmatmul.msk.f32.gmra.mxu1 %vm115_vm0, %v80_v25 }
  0x2b   :  { %334 = vmatmul.msk.f32.gmra.mxu3 %vm115_vm0, %v80_v25 }
  0x2d   :  { %332 = vmatmul.msk.f32.gmra.mxu2 %vm115_vm0, %v80_v25 }
  0x9e   :  { %v139_v29 = vpop.f32.mrf.mxu0  ;;  %v162_v30 = vpop.f32.mrf.mxu1 }
  0x9f   :  { %v140_v31 = vadd.f32 %v139_v29, %v107_v27  ;;  %v163_v32 = vadd.f32 %v162_v30, %v108_v28 }
  0xa1   :  { %v335_v33 = vmul.f32 -1.442695, %v140_v31  ;;  %v337_v34 = vmul.f32 -1.442695, %v163_v32 }
  0xa3   :  { %348 = vpow2.f32 %v335_v33 }
  0xa4   :  { %350 = vpow2.f32 %v337_v34 }
  0xa6   :  { %v142_v35 = vpop.f32.mrf.mxu0  ;;  %v165_v36 = vpop.f32.mrf.mxu1 }
  0xa7   :  { %v143_v37 = vadd.f32 %v142_v35, %v107_v27  ;;  %v166_v38 = vadd.f32 %v165_v36, %v108_v28  ;;  %v208_v51 = vpop.f32.mrf.mxu3  ;;  %v296_v27 = vld [vmem:[#allocation5] sm:$0xff] }
  0xa8   :  { %v185_v58 = vpop.f32.mrf.mxu2  ;;  %v209_v61 = vadd.f32 %v208_v51, %v110_v53 }
  0xa9   :  { %v349_v39 = vpop.eup %348  ;;  %v336_v40 = vmul.f32 -1.442695, %v143_v37  ;;  %v338_v43 = vmul.f32 -1.442695, %v166_v38  ;;  %v186_v3 = vadd.f32 %v185_v58, %v109_v57 }
  0xaa   :  { %v351_v41 = vpop.eup %350  ;;  %v220_v42 = vadd.f32 1.0, %v349_v39 }
  0xab   :  { %v560_v44 = vadd.f32 1.0, %v351_v41  ;;  %352 = vpow2.f32 %v336_v40  ;;  %v297_v41 = vld [vmem:[#allocation5 + $0x8] sm:$0xff] }
  0xac   :  { %354 = vrcp.f32 %v220_v42  ;;  %v233_v56 = vand.u32 2147483648, %v220_v42  ;;  %v231_v60 = vand.u32 2147483647, %v220_v42  ;;  %vm227_vm2 = vweird.f32 %v220_v42 }
  0xad   :  { %356 = vrcp.f32 %v560_v44  ;;  %vm265_vm6 = vweird.f32 %v560_v44  ;;  %v271_v17 = vand.u32 2147483648, %v560_v44  ;;  %v269_v23 = vand.u32 2147483647, %v560_v44 }
  0xae   :  { %358 = vpow2.f32 %v338_v43  ;;  %v234_v1 = vor.u32 1.1754944e-38, %v233_v56  ;;  %vm232_vm4 = vcmp.eq.f32.partialorder %v231_v60, 8.507059e+37 }
  0xaf   :  { %v211_v11 = vpop.f32.mrf.mxu3  ;;  %v272_v29 = vor.u32 1.1754944e-38, %v271_v17  ;;  %vm270_vm12 = vcmp.eq.f32.partialorder %v269_v23, 8.507059e+37 }
  0xb0   :  { %v188_v16 = vpop.f32.mrf.mxu2  ;;  %v212_v18 = vadd.f32 %v211_v11, %v110_v53 }
  0xb1   :  { %v353_v45 = vpop.eup %352  ;;  %v189_v25 = vadd.f32 %v188_v16, %v109_v57 }
  0xb2   :  { %v355_v46 = vpop.eup %354  ;;  %v221_v47 = vadd.f32 1.0, %v353_v45 }
  0xb3   :  { %v563_v48 = vpop.eup %356  ;;  %v223_v49 = vmul.f32 %v355_v46, %v220_v42  ;;  %vm228_vm1 = vweird.f32 %v355_v46 }
  0xb4   :  { %v359_v50 = vpop.eup %358  ;;  %360 = vrcp.f32 %v221_v47  ;;  %v261_v55 = vmul.f32 %v563_v48, %v560_v44  ;;  %vm229_vm3 = vmor %vm227_vm2, %vm228_vm1  ;;  %v248_v12 = vand.u32 2147483648, %v221_v47  ;;  %v246_v15 = vand.u32 2147483647, %v221_v47 }
  0xb5   :  { %v565_v52 = vadd.f32 1.0, %v359_v50  ;;  %v224_v54 = vsub.f32 1.0, %v223_v49  ;;  %vm266_vm7 = vweird.f32 %v563_v48  ;;  %vm242_vm8 = vweird.f32 %v221_v47 }
  0xb6   :  { %v262_v0 = vsub.f32 1.0, %v261_v55  ;;  %v249_v21 = vor.u32 1.1754944e-38, %v248_v12  ;;  %vm247_vm10 = vcmp.eq.f32.partialorder %v246_v15, 8.507059e+37  ;;  %vm267_vm11 = vmor %vm265_vm6, %vm266_vm7 }
  0xb7   :  { %362 = vrcp.f32 %v565_v52  ;;  %v225_v59 = vmul.f32 %v355_v46, %v224_v54  ;;  %vm280_vm13 = vweird.f32 %v565_v52  ;;  %v286_v36 = vand.u32 2147483648, %v565_v52 }
  0xb8   :  { %v263_v9 = vmul.f32 %v563_v48, %v262_v0  ;;  %v284_v38 = vand.u32 2147483647, %v565_v52 }
  0xb9   :  { %v226_v62 = vadd.f32 %v355_v46, %v225_v59  ;;  %v287_v42 = vor.u32 1.1754944e-38, %v286_v36 }
  0xba   :  { %v361_v63 = vpop.eup %360  ;;  %v264_v22 = vadd.f32 %v563_v48, %v263_v9  ;;  %vm285_vm0 = vcmp.eq.f32.partialorder %v284_v38, 8.507059e+37 }
  0xbb   :  { %v230_v2 = vsel %vm229_vm3, %v355_v46, %v226_v62  ;;  %v238_v4 = vmul.f32 %v361_v63, %v221_v47  ;;  %vm243_vm5 = vweird.f32 %v361_v63 }
  0xbc   :  { %v235_v5 = vsel %vm232_vm4, %v234_v1, %v230_v2  ;;  %vm244_vm9 = vmor %vm242_vm8, %vm243_vm5  ;;  %v268_v31 = vsel %vm267_vm11, %v563_v48, %v264_v22 }
  0xbd   :  { %v363_v6 = vpop.eup %362  ;;  %v290_v7 = vmul.f32 %v235_v5, %v209_v61  ;;  %v239_v8 = vsub.f32 1.0, %v238_v4  ;;  %v273_v35 = vsel %vm270_vm12, %v272_v29, %v268_v31 }
  0xbe   :  { %v276_v10 = vmul.f32 %v363_v6, %v565_v52  ;;  %vm281_vm14 = vweird.f32 %v363_v6 }
  0xbf   :  { %v292_v13 = vadd.f32 %v290_v7, %v186_v3  ;;  %v240_v14 = vmul.f32 %v361_v63, %v239_v8  ;;  %vm282_vm15 = vmor %vm280_vm13, %vm281_vm14 }
  0xc0   :  { %v277_v20 = vsub.f32 1.0, %v276_v10 }
  0xc1   :  { %364 = vtanh.f32 %v292_v13  ;;  %v241_v19 = vadd.f32 %v361_v63, %v240_v14 }
  0xc2   :  { %v278_v30 = vmul.f32 %v363_v6, %v277_v20 }
  0xc3   :  { %v245_v24 = vsel %vm244_vm9, %v361_v63, %v241_v19 }
  0xc4   :  { %v250_v26 = vsel %vm247_vm10, %v249_v21, %v245_v24  ;;  %v279_v37 = vadd.f32 %v363_v6, %v278_v30 }
  0xc5   :  { %v291_v28 = vmul.f32 %v250_v26, %v212_v18 }
  0xc6   :  { %v283_v43 = vsel %vm282_vm15, %v363_v6, %v279_v37 }
  0xc7   :  { %v365_v32 = vpop.eup %364  ;;  %v293_v33 = vadd.f32 %v291_v28, %v189_v25  ;;  %v288_v46 = vsel %vm285_vm0, %v287_v42, %v283_v43 }
  0xc8   :  { %v298_v34 = vsub.f32 %v296_v27, %v365_v32 }
  0xc9   :  { %366 = vtanh.f32 %v293_v33 }
  0xca   :  { %v300_v39 = vmul.f32 %v298_v34, %v273_v35 }
  0xcc   :  { %v302_v40 = vadd.f32 %v365_v32, %v300_v39 }
  0xce   :  { %304 = vst [vmem:[#allocation10] sm:$0xff] %v302_v40 }
  0xcf   :  { %v367_v44 = vpop.eup %366 }
  0xd0   :  { %v299_v45 = vsub.f32 %v297_v41, %v367_v44 }
  0xd2   :  { %v301_v47 = vmul.f32 %v299_v45, %v288_v46 }
  0xd4   :  { %v303_v48 = vadd.f32 %v367_v44, %v301_v47 }
  0xd6   :  { %305 = vst [vmem:[#allocation10 + $0x8] sm:$0xff] %v303_v48 }
  0xd7   :  { %318 = dma.vmem_to_hbm [thread:$0]  %s311_s3, 256, %s313_s13, [#allocation4], %s497_s23, %s497_s23, %s498_s24  }
  0xd8   :  { %494 = dma.done.wait [#allocation4], 256  }
  0xd9   :  { %495 = vsyncadd [#allocation4], 4294967040 }
  0xda   :  { %323 = vsyncpa [#allocation3], 1 }
  0xdb   :  { %324 = vsyncpa [#allocation6], 1 }
  0xdc   :  { %325 = vsyncpa [#allocation9], 1 }
  0xdd   :  { %326 = vsyncpa [#allocation4], 1 }

</bundles_post_ra>
